<compile_context>
chip_gen: v5e
topology: v5e:2x2
jax: 0.10.0
libtpu: 0.0.40
codegen_flags: <defaults>
</compile_context>

<pallas_src>
import functools

import jax
import jax.numpy as jnp
from jax import lax
from jax.experimental import pallas as pl
from jax.experimental.pallas import tpu as pltpu


# ----------------------------------------------------------------------------- kernel
def _reciprocal_snn_chunk_kernel(
    alpha_ref,   # (1, 2N)      f32           constant: [alpha_i * N | alpha_j * N]
    mem0_ref,    # (B, 2N)      f32           constant: initial mems, pre-multiplied by (1 - spike0)
    sp0_ref,     # (B, 2N)      matmul dtype  constant: initial spikes
    feed_ref,    # (TT, B, 2N)  f32           per-chunk block: precomputed prev @ W_prev
    w_rec_ref,   # (2N, 2N)     matmul dtype  constant: fused reciprocal weights
    out_ref,     # (TT, B, 4N)  f32           per-chunk block: [mem_i | mem_j | sp_i | sp_j]
    mem_sc,      # (B, 2N)      f32           scratch: membrane carry (post-reset)
    sp_sc,       # (B, 2N)      matmul dtype  scratch: spike carry
    *, thresh, tt,
):
    # Load the initial state into the resident VMEM carry on the first chunk only.
    @pl.when(pl.program_id(0) == 0)
    def _():
        mem_sc[...] = mem0_ref[...]
        sp_sc[...] = sp0_ref[...]

    # Loop-invariant loads / broadcasts, hoisted out of the unrolled time loop.
    w_rec = w_rec_ref[...]
    alpha = jnp.broadcast_to(alpha_ref[...], mem_sc.shape)   # (B, 2N) f32

    def step(t, carry):
        mem_c, sp_c = carry                               # f32 carry, matmul-dtype spikes
        # Only the recurrent dot remains on the serial per-step chain.
        rec = jnp.dot(sp_c, w_rec, preferred_element_type=jnp.float32)
        # Leaky carry; the (1 - spike) reset gate is exact-redundant here (see header).
        mem = feed_ref[t] + rec + mem_c * alpha
        # activation_function: spike = (mem - thresh > 0), mem reset where mem >= thresh.
        fired = mem - thresh > 0.0
        spike = fired.astype(jnp.float32)
        mem = jnp.where(mem < thresh, mem, 0.0)
        # One unmasked, 128-lane-wide store per timestep.
        out_ref[t] = jnp.concatenate([mem, spike], axis=-1)
        return mem, fired.astype(sp_c.dtype)

    mem_f, sp_f = lax.fori_loop(0, tt, step, (mem_sc[...], sp_sc[...]),
                                unroll=True)
    mem_sc[...] = mem_f
    sp_sc[...] = sp_f


# ----------------------------------------------------------------- parameter preparation
def prepare_reciprocal_snn_params(w_i, w_j, w_ij, w_ji, tau_m_i, tau_m_j,
                                  matmul_dtype=jnp.bfloat16):
    """Build fused, pre-transposed weights once (hoisted out of the per-step path)."""
    num_i, num_in_i = w_i.shape
    num_j, num_in_j = w_j.shape
    assert num_i == num_j, "reciprocal wiring of the reference module requires num_i == num_j"
    n = num_i
    kprev = num_in_i + num_in_j

    # Block-diagonal feedforward weights:  [prev_i | prev_j] @ W_prev = [a_i | a_j]
    w_prev = jnp.zeros((kprev, 2 * n), jnp.float32)
    w_prev = w_prev.at[:num_in_i, :n].set(w_i.T.astype(jnp.float32))   # a_i
    w_prev = w_prev.at[num_in_i:, n:].set(w_j.T.astype(jnp.float32))   # a_j

    # Anti-block-diagonal recurrent weights: [sp_i | sp_j] @ W_rec = [b_i | b_j]
    w_rec = jnp.zeros((2 * n, 2 * n), jnp.float32)
    w_rec = w_rec.at[:n, n:].set(w_ji.T.astype(jnp.float32))           # b_j = sp_i @ w_ji^T
    w_rec = w_rec.at[n:, :n].set(w_ij.T.astype(jnp.float32))           # b_i = sp_j @ w_ij^T

    alpha_i = jax.nn.sigmoid(jnp.float32(tau_m_i))
    alpha_j = jax.nn.sigmoid(jnp.float32(tau_m_j))
    alpha = jnp.concatenate([jnp.full((1, n), alpha_i, jnp.float32),
                             jnp.full((1, n), alpha_j, jnp.float32)], axis=-1)

    return dict(
        w_prev=w_prev.astype(matmul_dtype),
        w_rec=w_rec.astype(matmul_dtype),
        alpha=alpha,
        n=n, num_in_i=num_in_i, num_in_j=num_in_j,
        matmul_dtype=matmul_dtype,
    )


def _pick_time_chunk(T, max_chunk=64):
    tt = min(T, max_chunk)
    while T % tt:
        tt -= 1
    return tt


# ------------------------------------------------------------------------------ wrappers
def reciprocal_snn_rollout(prev_spikes_i_seq, prev_spikes_j_seq,
                           own_mems_i, own_mems_j, own_spikes_i, own_spikes_j,
                           params, batch_size, thresh=0.3, time_chunk=None):
    """Run T timesteps of the reciprocal SNN layer with the recurrence in one pallas_call.

    Each step is exactly the module's forward, with its (mems, spikes) outputs fed
    back as the next step's (own_mems, own_spikes).
    Returns per-step trajectories (T, B, N) for mems_i, mems_j, spikes_i, spikes_j.
    """
    n = params["n"]
    dt = params["matmul_dtype"]
    T = prev_spikes_i_seq.shape[0]
    tt = _pick_time_chunk(T) if time_chunk is None else time_chunk
    assert T % tt == 0, "time_chunk must divide T"

    prev_i = prev_spikes_i_seq.reshape(T, batch_size, -1)
    prev_j = prev_spikes_j_seq.reshape(T, batch_size, -1)
    prev = jnp.concatenate([prev_i, prev_j], axis=-1).astype(dt)        # (T, B, Kprev)

    # Non-recurrent feedforward drive, hoisted out of the sequential recurrence:
    # one well-shaped (T*B, Kprev) @ (Kprev, 2N) matmul in plain XLA, f32 accumulation.
    prev_feed = jnp.einsum("tbk,kn->tbn", prev, params["w_prev"],
                           preferred_element_type=jnp.float32)           # (T, B, 2N) f32

    # Initial state; fold the (1 - spike) reset gate into the membranes once here.
    sp0 = jnp.concatenate([own_spikes_i, own_spikes_j], axis=-1).astype(jnp.float32)
    mem0 = jnp.concatenate([own_mems_i, own_mems_j], axis=-1).astype(jnp.float32)
    mem0 = mem0 * (1.0 - sp0)                                            # (B, 2N) f32

    kernel = functools.partial(_reciprocal_snn_chunk_kernel,
                               thresh=float(thresh), tt=tt)

    out = pl.pallas_call(
        kernel,
        out_shape=jax.ShapeDtypeStruct((T, batch_size, 4 * n), jnp.float32),
        grid_spec=pltpu.PrefetchScalarGridSpec(
            num_scalar_prefetch=0,
            grid=(T // tt,),
            in_specs=[
                pl.BlockSpec((1, 2 * n), lambda c: (0, 0)),                   # alpha
                pl.BlockSpec((batch_size, 2 * n), lambda c: (0, 0)),          # initial mems
                pl.BlockSpec((batch_size, 2 * n), lambda c: (0, 0)),          # initial spikes
                pl.BlockSpec((tt, batch_size, 2 * n), lambda c: (c, 0, 0)),   # prev feed chunk
                pl.BlockSpec((2 * n, 2 * n), lambda c: (0, 0)),               # fused W_rec
            ],
            out_specs=pl.BlockSpec((tt, batch_size, 4 * n), lambda c: (c, 0, 0)),
            scratch_shapes=[
                pltpu.VMEM((batch_size, 2 * n), jnp.float32),   # membrane carry (f32)
                pltpu.VMEM((batch_size, 2 * n), dt),            # spike carry (matmul dtype)
            ],
        ),
        compiler_params=pltpu.CompilerParams(dimension_semantics=("arbitrary",)),
    )(params["alpha"], mem0, sp0.astype(dt), prev_feed, params["w_rec"])

    mems_i = out[:, :, :n]
    mems_j = out[:, :, n:2 * n]
    spikes_i = out[:, :, 2 * n:3 * n]
    spikes_j = out[:, :, 3 * n:]
    return mems_i, mems_j, spikes_i, spikes_j


def reciprocal_snn_forward(prev_spikes_i, prev_spikes_j,
                           own_mems_i, own_mems_j, own_spikes_i, own_spikes_j,
                           params, batch_size, thresh=0.3):
    """Single-step forward with the same signature semantics as the PyTorch module."""
    mi, mj, si, sj = reciprocal_snn_rollout(
        prev_spikes_i[None], prev_spikes_j[None],
        own_mems_i, own_mems_j, own_spikes_i, own_spikes_j,
        params, batch_size, thresh)
    return mi[0], mj[0], si[0], sj[0]


# ----------------------------------------------------------------------------- reference
def reference_rollout(prev_i_seq, prev_j_seq, mem_i, mem_j, sp_i, sp_j,
                      w_i, w_j, w_ij, w_ji, tau_m_i, tau_m_j,
                      thresh=0.3, matmul_dtype=jnp.float32):
    """Pure-JAX replica of the PyTorch update_mem, chained over T steps.

    Uses the same matmul operand dtype as the kernel (f32 accumulation) so the
    comparison is apples-to-apples; the math is the module's original
    four-linear formulation (including the (1 - spike) gate).
    """
    alpha_i = jax.nn.sigmoid(jnp.float32(tau_m_i))
    alpha_j = jax.nn.sigmoid(jnp.float32(tau_m_j))
    wt_i = w_i.T.astype(matmul_dtype)
    wt_j = w_j.T.astype(matmul_dtype)
    wt_ij = w_ij.T.astype(matmul_dtype)
    wt_ji = w_ji.T.astype(matmul_dtype)
    B = mem_i.shape[0]

    mi_l, mj_l, si_l, sj_l = [], [], [], []
    for t in range(prev_i_seq.shape[0]):
        pi = prev_i_seq[t].reshape(B, -1).astype(matmul_dtype)
        pj = prev_j_seq[t].reshape(B, -1).astype(matmul_dtype)
        a_i = jnp.dot(pi, wt_i, preferred_element_type=jnp.float32)
        a_j = jnp.dot(pj, wt_j, preferred_element_type=jnp.float32)
        b_i = jnp.dot(sp_j.astype(matmul_dtype), wt_ij, preferred_element_type=jnp.float32)
        b_j = jnp.dot(sp_i.astype(matmul_dtype), wt_ji, preferred_element_type=jnp.float32)
        m_i = a_i + b_i + mem_i * alpha_i * (1.0 - sp_i)
        m_j = a_j + b_j + mem_j * alpha_j * (1.0 - sp_j)
        sp_i = (m_i - thresh > 0.0).astype(jnp.float32)
        sp_j = (m_j - thresh > 0.0).astype(jnp.float32)
        mem_i = m_i * (m_i < thresh).astype(jnp.float32)
        mem_j = m_j * (m_j < thresh).astype(jnp.float32)
        mi_l.append(mem_i); mj_l.append(mem_j); si_l.append(sp_i); sj_l.append(sp_j)
    return (jnp.stack(mi_l), jnp.stack(mj_l), jnp.stack(si_l), jnp.stack(sj_l))


# ---------------------------------------------------------------------------------- main
if __name__ == "__main__":
    batch_size = 8
    num_in_i = 64
    num_in_j = 32
    num_i = num_j = 32          # module wiring requires num_i == num_j
    T = 8
    tau_m_i, tau_m_j = 2.0, 3.0
    thresh = 0.3

    key = jax.random.PRNGKey(0)
    keys = jax.random.split(key, 10)

    # PyTorch nn.Linear-style uniform(-1/sqrt(in), 1/sqrt(in)) init, bias=False.
    def init_linear(k, out_f, in_f):
        bound = 1.0 / jnp.sqrt(jnp.float32(in_f))
        return jax.random.uniform(k, (out_f, in_f), jnp.float32, -bound, bound)

    w_i = init_linear(keys[0], num_i, num_in_i)     # linear_i
    w_j = init_linear(keys[1], num_j, num_in_j)     # linear_j
    w_ij = init_linear(keys[2], num_j, num_i)       # linear_ij
    w_ji = init_linear(keys[3], num_i, num_j)       # linear_ji

    # Example inputs: T-step binary spike sequences, gaussian initial membranes.
    prev_spikes_i_seq = (jax.random.uniform(keys[4], (T, batch_size, num_in_i)) < 0.3
                         ).astype(jnp.float32)
    prev_spikes_j_seq = (jax.random.uniform(keys[5], (T, batch_size, num_in_j)) < 0.3
                         ).astype(jnp.float32)
    own_spikes_i = (jax.random.uniform(keys[6], (batch_size, num_i)) < 0.2).astype(jnp.float32)
    own_spikes_j = (jax.random.uniform(keys[7], (batch_size, num_j)) < 0.2).astype(jnp.float32)
    own_mems_i = 0.2 * jax.random.normal(keys[8], (batch_size, num_i), jnp.float32)
    own_mems_j = 0.2 * jax.random.normal(keys[9], (batch_size, num_j), jnp.float32)

    # Exercise both the f32 path (exact module numerics) and the bf16-MXU path
    # (the performance configuration: bf16 weights/spikes into the MXU, f32 elsewhere).
    for matmul_dtype in (jnp.float32, jnp.bfloat16):
        params = prepare_reciprocal_snn_params(
            w_i, w_j, w_ij, w_ji, tau_m_i, tau_m_j, matmul_dtype=matmul_dtype)

        # Multi-step rollout: one pallas_call, TT-chunked unrolled time loop inside.
        mi, mj, si, sj = reciprocal_snn_rollout(
            prev_spikes_i_seq, prev_spikes_j_seq,
            own_mems_i, own_mems_j, own_spikes_i, own_spikes_j,
            params, batch_size, thresh)
        jax.block_until_ready((mi, mj, si, sj))

        rmi, rmj, rsi, rsj = reference_rollout(
            prev_spikes_i_seq, prev_spikes_j_seq,
            own_mems_i, own_mems_j, own_spikes_i, own_spikes_j,
            w_i, w_j, w_ij, w_ji, tau_m_i, tau_m_j,
            thresh=thresh, matmul_dtype=matmul_dtype)

        assert jnp.allclose(mi, rmi, atol=1e-5), f"mems_i mismatch ({matmul_dtype})"
        assert jnp.allclose(mj, rmj, atol=1e-5), f"mems_j mismatch ({matmul_dtype})"
        assert jnp.array_equal(si, rsi), f"spikes_i mismatch ({matmul_dtype})"
        assert jnp.array_equal(sj, rsj), f"spikes_j mismatch ({matmul_dtype})"

        # Single-step API (module-equivalent forward) check against step 0 of the reference.
        m1i, m1j, s1i, s1j = reciprocal_snn_forward(
            prev_spikes_i_seq[0], prev_spikes_j_seq[0],
            own_mems_i, own_mems_j, own_spikes_i, own_spikes_j,
            params, batch_size, thresh)
        jax.block_until_ready((m1i, m1j, s1i, s1j))
        assert jnp.allclose(m1i, rmi[0], atol=1e-5)
        assert jnp.allclose(m1j, rmj[0], atol=1e-5)
        assert jnp.array_equal(s1i, rsi[0])
        assert jnp.array_equal(s1j, rsj[0])

    print("KERNEL_OK")
</pallas_src>

<mosaic_0001>
module attributes {stable_mosaic.version = 11 : i64} {
  func.func @_reciprocal_snn_chunk_kernel(%arg0: i32, %arg1: memref<1x64xf32, #tpu.memory_space<vmem>>, %arg2: memref<8x64xf32, #tpu.memory_space<vmem>>, %arg3: memref<8x64xf32, #tpu.memory_space<vmem>>, %arg4: memref<8x8x64xf32, #tpu.memory_space<vmem>>, %arg5: memref<64x64xf32, #tpu.memory_space<vmem>>, %arg6: memref<8x8x128xf32, #tpu.memory_space<vmem>>, %arg7: memref<8x64xf32, #tpu.memory_space<vmem>>, %arg8: memref<8x64xf32, #tpu.memory_space<vmem>>) attributes {dimension_semantics = [#tpu.dimension_semantics<arbitrary>], iteration_bounds = array<i64: 1>, scalar_prefetch = 0 : i64, scratch_operands = 2 : i64, tpu.core_type = #tpu.core_type<tc>, window_params = [{pipeline_mode = #tpu.pipeline_mode<synchronous>, transform_indices = @transform_0, window_bounds = array<i64: 1, 64>}, {pipeline_mode = #tpu.pipeline_mode<synchronous>, transform_indices = @transform_1, window_bounds = array<i64: 8, 64>}, {pipeline_mode = #tpu.pipeline_mode<synchronous>, transform_indices = @transform_2, window_bounds = array<i64: 8, 64>}, {transform_indices = @transform_3, window_bounds = array<i64: 8, 8, 64>}, {pipeline_mode = #tpu.pipeline_mode<synchronous>, transform_indices = @transform_4, window_bounds = array<i64: 64, 64>}, {transform_indices = @transform_5, window_bounds = array<i64: 8, 8, 128>}]} {
    %c0_i32 = arith.constant 0 : i32
    %0 = arith.cmpi eq, %arg0, %c0_i32 : i32
    %1 = arith.extui %0 : i1 to i32
    %c0_i32_0 = arith.constant 0 : i32
    %2 = arith.cmpi ne, %1, %c0_i32_0 : i32
    scf.if %2 {
      %c0_84 = arith.constant 0 : index
      %c0_85 = arith.constant 0 : index
      %203 = vector.load %arg2[%c0_84, %c0_85] : memref<8x64xf32, #tpu.memory_space<vmem>>, vector<8x64xf32>
      %c0_86 = arith.constant 0 : index
      %c0_87 = arith.constant 0 : index
      %204 = vector.load %arg7[%c0_86, %c0_87] : memref<8x64xf32, #tpu.memory_space<vmem>>, vector<8x64xf32>
      tpu.vector_store %arg7[%c0_86, %c0_87], %203 {strides = array<i32>} : memref<8x64xf32, #tpu.memory_space<vmem>>, vector<8x64xf32>,
      %c0_88 = arith.constant 0 : index
      %c0_89 = arith.constant 0 : index
      %205 = vector.load %arg3[%c0_88, %c0_89] : memref<8x64xf32, #tpu.memory_space<vmem>>, vector<8x64xf32>
      %c0_90 = arith.constant 0 : index
      %c0_91 = arith.constant 0 : index
      %206 = vector.load %arg8[%c0_90, %c0_91] : memref<8x64xf32, #tpu.memory_space<vmem>>, vector<8x64xf32>
      tpu.vector_store %arg8[%c0_90, %c0_91], %205 {strides = array<i32>} : memref<8x64xf32, #tpu.memory_space<vmem>>, vector<8x64xf32>,
    } else {
    }
    %c0 = arith.constant 0 : index
    %c0_1 = arith.constant 0 : index
    %3 = vector.load %arg5[%c0, %c0_1] : memref<64x64xf32, #tpu.memory_space<vmem>>, vector<64x64xf32>
    %c0_2 = arith.constant 0 : index
    %c0_3 = arith.constant 0 : index
    %4 = vector.load %arg1[%c0_2, %c0_3] : memref<1x64xf32, #tpu.memory_space<vmem>>, vector<1x64xf32>
    %5 = vector.shape_cast %4 : vector<1x64xf32> to vector<1x64xf32>
    %6 = vector.broadcast %5 : vector<1x64xf32> to vector<8x64xf32>
    %c0_4 = arith.constant 0 : index
    %c0_5 = arith.constant 0 : index
    %7 = vector.load %arg7[%c0_4, %c0_5] : memref<8x64xf32, #tpu.memory_space<vmem>>, vector<8x64xf32>
    %c0_6 = arith.constant 0 : index
    %c0_7 = arith.constant 0 : index
    %8 = vector.load %arg8[%c0_6, %c0_7] : memref<8x64xf32, #tpu.memory_space<vmem>>, vector<8x64xf32>
    %c0_i32_8 = arith.constant 0 : i32
    %cst = arith.constant dense<0.000000e+00> : vector<8x64xf32>
    %9 = tpu.matmul %8, %3, %cst {dimension_numbers = #tpu.dot_dimension_numbers<[1], [0], [0], [1], [0, 0, 1, 1], [], []>} : vector<8x64xf32>, vector<64x64xf32>, vector<8x64xf32> -> vector<8x64xf32>
    %10 = arith.index_cast %c0_i32_8 : i32 to index
    %c0_9 = arith.constant 0 : index
    %c0_10 = arith.constant 0 : index
    %11 = vector.load %arg4[%10, %c0_9, %c0_10] : memref<8x8x64xf32, #tpu.memory_space<vmem>>, vector<1x8x64xf32>
    %12 = vector.shape_cast %11 : vector<1x8x64xf32> to vector<8x64xf32>
    %13 = arith.addf %12, %9 : vector<8x64xf32>
    %14 = arith.mulf %7, %6 : vector<8x64xf32>
    %15 = arith.addf %13, %14 : vector<8x64xf32>
    %cst_11 = arith.constant 3.000000e-01 : f32
    %16 = vector.broadcast %cst_11 : f32 to vector<8x64xf32>
    %17 = arith.subf %15, %16 : vector<8x64xf32>
    %cst_12 = arith.constant 0.000000e+00 : f32
    %18 = vector.broadcast %cst_12 : f32 to vector<8x64xf32>
    %19 = arith.cmpf ogt, %17, %18 : vector<8x64xf32>
    %20 = arith.extui %19 : vector<8x64xi1> to vector<8x64xi32>
    %21 = arith.sitofp %20 : vector<8x64xi32> to vector<8x64xf32>
    %cst_13 = arith.constant 3.000000e-01 : f32
    %22 = vector.broadcast %cst_13 : f32 to vector<8x64xf32>
    %23 = arith.cmpf olt, %15, %22 : vector<8x64xf32>
    %cst_14 = arith.constant 0.000000e+00 : f32
    %24 = vector.broadcast %cst_14 : f32 to vector<8x64xf32>
    %25 = arith.select %23, %15, %24 : vector<8x64xi1>, vector<8x64xf32>
    %26 = tpu.concatenate %25, %21 in 1 : vector<8x64xf32>, vector<8x64xf32> -> vector<8x128xf32>
    %27 = arith.index_cast %c0_i32_8 : i32 to index
    %c0_15 = arith.constant 0 : index
    %c0_16 = arith.constant 0 : index
    %28 = vector.load %arg6[%27, %c0_15, %c0_16] : memref<8x8x128xf32, #tpu.memory_space<vmem>>, vector<1x8x128xf32>
    %29 = vector.shape_cast %28 : vector<1x8x128xf32> to vector<8x128xf32>
    %30 = vector.shape_cast %26 : vector<8x128xf32> to vector<1x8x128xf32>
    tpu.vector_store %arg6[%27, %c0_15, %c0_16], %30 {strides = array<i32>} : memref<8x8x128xf32, #tpu.memory_space<vmem>>, vector<1x8x128xf32>,
    %31 = arith.extui %19 : vector<8x64xi1> to vector<8x64xi32>
    %32 = arith.sitofp %31 : vector<8x64xi32> to vector<8x64xf32>
    %c1_i32 = arith.constant 1 : i32
    %cst_17 = arith.constant dense<0.000000e+00> : vector<8x64xf32>
    %33 = tpu.matmul %32, %3, %cst_17 {dimension_numbers = #tpu.dot_dimension_numbers<[1], [0], [0], [1], [0, 0, 1, 1], [], []>} : vector<8x64xf32>, vector<64x64xf32>, vector<8x64xf32> -> vector<8x64xf32>
    %34 = arith.index_cast %c1_i32 : i32 to index
    %c0_18 = arith.constant 0 : index
    %c0_19 = arith.constant 0 : index
    %35 = vector.load %arg4[%34, %c0_18, %c0_19] : memref<8x8x64xf32, #tpu.memory_space<vmem>>, vector<1x8x64xf32>
    %36 = vector.shape_cast %35 : vector<1x8x64xf32> to vector<8x64xf32>
    %37 = arith.addf %36, %33 : vector<8x64xf32>
    %38 = arith.mulf %25, %6 : vector<8x64xf32>
    %39 = arith.addf %37, %38 : vector<8x64xf32>
    %cst_20 = arith.constant 3.000000e-01 : f32
    %40 = vector.broadcast %cst_20 : f32 to vector<8x64xf32>
    %41 = arith.subf %39, %40 : vector<8x64xf32>
    %cst_21 = arith.constant 0.000000e+00 : f32
    %42 = vector.broadcast %cst_21 : f32 to vector<8x64xf32>
    %43 = arith.cmpf ogt, %41, %42 : vector<8x64xf32>
    %44 = arith.extui %43 : vector<8x64xi1> to vector<8x64xi32>
    %45 = arith.sitofp %44 : vector<8x64xi32> to vector<8x64xf32>
    %cst_22 = arith.constant 3.000000e-01 : f32
    %46 = vector.broadcast %cst_22 : f32 to vector<8x64xf32>
    %47 = arith.cmpf olt, %39, %46 : vector<8x64xf32>
    %cst_23 = arith.constant 0.000000e+00 : f32
    %48 = vector.broadcast %cst_23 : f32 to vector<8x64xf32>
    %49 = arith.select %47, %39, %48 : vector<8x64xi1>, vector<8x64xf32>
    %50 = tpu.concatenate %49, %45 in 1 : vector<8x64xf32>, vector<8x64xf32> -> vector<8x128xf32>
    %51 = arith.index_cast %c1_i32 : i32 to index
    %c0_24 = arith.constant 0 : index
    %c0_25 = arith.constant 0 : index
    %52 = vector.load %arg6[%51, %c0_24, %c0_25] : memref<8x8x128xf32, #tpu.memory_space<vmem>>, vector<1x8x128xf32>
    %53 = vector.shape_cast %52 : vector<1x8x128xf32> to vector<8x128xf32>
    %54 = vector.shape_cast %50 : vector<8x128xf32> to vector<1x8x128xf32>
    tpu.vector_store %arg6[%51, %c0_24, %c0_25], %54 {strides = array<i32>} : memref<8x8x128xf32, #tpu.memory_space<vmem>>, vector<1x8x128xf32>,
    %55 = arith.extui %43 : vector<8x64xi1> to vector<8x64xi32>
    %56 = arith.sitofp %55 : vector<8x64xi32> to vector<8x64xf32>
    %c2_i32 = arith.constant 2 : i32
    %cst_26 = arith.constant dense<0.000000e+00> : vector<8x64xf32>
    %57 = tpu.matmul %56, %3, %cst_26 {dimension_numbers = #tpu.dot_dimension_numbers<[1], [0], [0], [1], [0, 0, 1, 1], [], []>} : vector<8x64xf32>, vector<64x64xf32>, vector<8x64xf32> -> vector<8x64xf32>
    %58 = arith.index_cast %c2_i32 : i32 to index
    %c0_27 = arith.constant 0 : index
    %c0_28 = arith.constant 0 : index
    %59 = vector.load %arg4[%58, %c0_27, %c0_28] : memref<8x8x64xf32, #tpu.memory_space<vmem>>, vector<1x8x64xf32>
    %60 = vector.shape_cast %59 : vector<1x8x64xf32> to vector<8x64xf32>
    %61 = arith.addf %60, %57 : vector<8x64xf32>
    %62 = arith.mulf %49, %6 : vector<8x64xf32>
    %63 = arith.addf %61, %62 : vector<8x64xf32>
    %cst_29 = arith.constant 3.000000e-01 : f32
    %64 = vector.broadcast %cst_29 : f32 to vector<8x64xf32>
    %65 = arith.subf %63, %64 : vector<8x64xf32>
    %cst_30 = arith.constant 0.000000e+00 : f32
    %66 = vector.broadcast %cst_30 : f32 to vector<8x64xf32>
    %67 = arith.cmpf ogt, %65, %66 : vector<8x64xf32>
    %68 = arith.extui %67 : vector<8x64xi1> to vector<8x64xi32>
    %69 = arith.sitofp %68 : vector<8x64xi32> to vector<8x64xf32>
    %cst_31 = arith.constant 3.000000e-01 : f32
    %70 = vector.broadcast %cst_31 : f32 to vector<8x64xf32>
    %71 = arith.cmpf olt, %63, %70 : vector<8x64xf32>
    %cst_32 = arith.constant 0.000000e+00 : f32
    %72 = vector.broadcast %cst_32 : f32 to vector<8x64xf32>
    %73 = arith.select %71, %63, %72 : vector<8x64xi1>, vector<8x64xf32>
    %74 = tpu.concatenate %73, %69 in 1 : vector<8x64xf32>, vector<8x64xf32> -> vector<8x128xf32>
    %75 = arith.index_cast %c2_i32 : i32 to index
    %c0_33 = arith.constant 0 : index
    %c0_34 = arith.constant 0 : index
    %76 = vector.load %arg6[%75, %c0_33, %c0_34] : memref<8x8x128xf32, #tpu.memory_space<vmem>>, vector<1x8x128xf32>
    %77 = vector.shape_cast %76 : vector<1x8x128xf32> to vector<8x128xf32>
    %78 = vector.shape_cast %74 : vector<8x128xf32> to vector<1x8x128xf32>
    tpu.vector_store %arg6[%75, %c0_33, %c0_34], %78 {strides = array<i32>} : memref<8x8x128xf32, #tpu.memory_space<vmem>>, vector<1x8x128xf32>,
    %79 = arith.extui %67 : vector<8x64xi1> to vector<8x64xi32>
    %80 = arith.sitofp %79 : vector<8x64xi32> to vector<8x64xf32>
    %c3_i32 = arith.constant 3 : i32
    %cst_35 = arith.constant dense<0.000000e+00> : vector<8x64xf32>
    %81 = tpu.matmul %80, %3, %cst_35 {dimension_numbers = #tpu.dot_dimension_numbers<[1], [0], [0], [1], [0, 0, 1, 1], [], []>} : vector<8x64xf32>, vector<64x64xf32>, vector<8x64xf32> -> vector<8x64xf32>
    %82 = arith.index_cast %c3_i32 : i32 to index
    %c0_36 = arith.constant 0 : index
    %c0_37 = arith.constant 0 : index
    %83 = vector.load %arg4[%82, %c0_36, %c0_37] : memref<8x8x64xf32, #tpu.memory_space<vmem>>, vector<1x8x64xf32>
    %84 = vector.shape_cast %83 : vector<1x8x64xf32> to vector<8x64xf32>
    %85 = arith.addf %84, %81 : vector<8x64xf32>
    %86 = arith.mulf %73, %6 : vector<8x64xf32>
    %87 = arith.addf %85, %86 : vector<8x64xf32>
    %cst_38 = arith.constant 3.000000e-01 : f32
    %88 = vector.broadcast %cst_38 : f32 to vector<8x64xf32>
    %89 = arith.subf %87, %88 : vector<8x64xf32>
    %cst_39 = arith.constant 0.000000e+00 : f32
    %90 = vector.broadcast %cst_39 : f32 to vector<8x64xf32>
    %91 = arith.cmpf ogt, %89, %90 : vector<8x64xf32>
    %92 = arith.extui %91 : vector<8x64xi1> to vector<8x64xi32>
    %93 = arith.sitofp %92 : vector<8x64xi32> to vector<8x64xf32>
    %cst_40 = arith.constant 3.000000e-01 : f32
    %94 = vector.broadcast %cst_40 : f32 to vector<8x64xf32>
    %95 = arith.cmpf olt, %87, %94 : vector<8x64xf32>
    %cst_41 = arith.constant 0.000000e+00 : f32
    %96 = vector.broadcast %cst_41 : f32 to vector<8x64xf32>
    %97 = arith.select %95, %87, %96 : vector<8x64xi1>, vector<8x64xf32>
    %98 = tpu.concatenate %97, %93 in 1 : vector<8x64xf32>, vector<8x64xf32> -> vector<8x128xf32>
    %99 = arith.index_cast %c3_i32 : i32 to index
    %c0_42 = arith.constant 0 : index
    %c0_43 = arith.constant 0 : index
    %100 = vector.load %arg6[%99, %c0_42, %c0_43] : memref<8x8x128xf32, #tpu.memory_space<vmem>>, vector<1x8x128xf32>
    %101 = vector.shape_cast %100 : vector<1x8x128xf32> to vector<8x128xf32>
    %102 = vector.shape_cast %98 : vector<8x128xf32> to vector<1x8x128xf32>
    tpu.vector_store %arg6[%99, %c0_42, %c0_43], %102 {strides = array<i32>} : memref<8x8x128xf32, #tpu.memory_space<vmem>>, vector<1x8x128xf32>,
    %103 = arith.extui %91 : vector<8x64xi1> to vector<8x64xi32>
    %104 = arith.sitofp %103 : vector<8x64xi32> to vector<8x64xf32>
    %c4_i32 = arith.constant 4 : i32
    %cst_44 = arith.constant dense<0.000000e+00> : vector<8x64xf32>
    %105 = tpu.matmul %104, %3, %cst_44 {dimension_numbers = #tpu.dot_dimension_numbers<[1], [0], [0], [1], [0, 0, 1, 1], [], []>} : vector<8x64xf32>, vector<64x64xf32>, vector<8x64xf32> -> vector<8x64xf32>
    %106 = arith.index_cast %c4_i32 : i32 to index
    %c0_45 = arith.constant 0 : index
    %c0_46 = arith.constant 0 : index
    %107 = vector.load %arg4[%106, %c0_45, %c0_46] : memref<8x8x64xf32, #tpu.memory_space<vmem>>, vector<1x8x64xf32>
    %108 = vector.shape_cast %107 : vector<1x8x64xf32> to vector<8x64xf32>
    %109 = arith.addf %108, %105 : vector<8x64xf32>
    %110 = arith.mulf %97, %6 : vector<8x64xf32>
    %111 = arith.addf %109, %110 : vector<8x64xf32>
    %cst_47 = arith.constant 3.000000e-01 : f32
    %112 = vector.broadcast %cst_47 : f32 to vector<8x64xf32>
    %113 = arith.subf %111, %112 : vector<8x64xf32>
    %cst_48 = arith.constant 0.000000e+00 : f32
    %114 = vector.broadcast %cst_48 : f32 to vector<8x64xf32>
    %115 = arith.cmpf ogt, %113, %114 : vector<8x64xf32>
    %116 = arith.extui %115 : vector<8x64xi1> to vector<8x64xi32>
    %117 = arith.sitofp %116 : vector<8x64xi32> to vector<8x64xf32>
    %cst_49 = arith.constant 3.000000e-01 : f32
    %118 = vector.broadcast %cst_49 : f32 to vector<8x64xf32>
    %119 = arith.cmpf olt, %111, %118 : vector<8x64xf32>
    %cst_50 = arith.constant 0.000000e+00 : f32
    %120 = vector.broadcast %cst_50 : f32 to vector<8x64xf32>
    %121 = arith.select %119, %111, %120 : vector<8x64xi1>, vector<8x64xf32>
    %122 = tpu.concatenate %121, %117 in 1 : vector<8x64xf32>, vector<8x64xf32> -> vector<8x128xf32>
    %123 = arith.index_cast %c4_i32 : i32 to index
    %c0_51 = arith.constant 0 : index
    %c0_52 = arith.constant 0 : index
    %124 = vector.load %arg6[%123, %c0_51, %c0_52] : memref<8x8x128xf32, #tpu.memory_space<vmem>>, vector<1x8x128xf32>
    %125 = vector.shape_cast %124 : vector<1x8x128xf32> to vector<8x128xf32>
    %126 = vector.shape_cast %122 : vector<8x128xf32> to vector<1x8x128xf32>
    tpu.vector_store %arg6[%123, %c0_51, %c0_52], %126 {strides = array<i32>} : memref<8x8x128xf32, #tpu.memory_space<vmem>>, vector<1x8x128xf32>,
    %127 = arith.extui %115 : vector<8x64xi1> to vector<8x64xi32>
    %128 = arith.sitofp %127 : vector<8x64xi32> to vector<8x64xf32>
    %c5_i32 = arith.constant 5 : i32
    %cst_53 = arith.constant dense<0.000000e+00> : vector<8x64xf32>
    %129 = tpu.matmul %128, %3, %cst_53 {dimension_numbers = #tpu.dot_dimension_numbers<[1], [0], [0], [1], [0, 0, 1, 1], [], []>} : vector<8x64xf32>, vector<64x64xf32>, vector<8x64xf32> -> vector<8x64xf32>
    %130 = arith.index_cast %c5_i32 : i32 to index
    %c0_54 = arith.constant 0 : index
    %c0_55 = arith.constant 0 : index
    %131 = vector.load %arg4[%130, %c0_54, %c0_55] : memref<8x8x64xf32, #tpu.memory_space<vmem>>, vector<1x8x64xf32>
    %132 = vector.shape_cast %131 : vector<1x8x64xf32> to vector<8x64xf32>
    %133 = arith.addf %132, %129 : vector<8x64xf32>
    %134 = arith.mulf %121, %6 : vector<8x64xf32>
    %135 = arith.addf %133, %134 : vector<8x64xf32>
    %cst_56 = arith.constant 3.000000e-01 : f32
    %136 = vector.broadcast %cst_56 : f32 to vector<8x64xf32>
    %137 = arith.subf %135, %136 : vector<8x64xf32>
    %cst_57 = arith.constant 0.000000e+00 : f32
    %138 = vector.broadcast %cst_57 : f32 to vector<8x64xf32>
    %139 = arith.cmpf ogt, %137, %138 : vector<8x64xf32>
    %140 = arith.extui %139 : vector<8x64xi1> to vector<8x64xi32>
    %141 = arith.sitofp %140 : vector<8x64xi32> to vector<8x64xf32>
    %cst_58 = arith.constant 3.000000e-01 : f32
    %142 = vector.broadcast %cst_58 : f32 to vector<8x64xf32>
    %143 = arith.cmpf olt, %135, %142 : vector<8x64xf32>
    %cst_59 = arith.constant 0.000000e+00 : f32
    %144 = vector.broadcast %cst_59 : f32 to vector<8x64xf32>
    %145 = arith.select %143, %135, %144 : vector<8x64xi1>, vector<8x64xf32>
    %146 = tpu.concatenate %145, %141 in 1 : vector<8x64xf32>, vector<8x64xf32> -> vector<8x128xf32>
    %147 = arith.index_cast %c5_i32 : i32 to index
    %c0_60 = arith.constant 0 : index
    %c0_61 = arith.constant 0 : index
    %148 = vector.load %arg6[%147, %c0_60, %c0_61] : memref<8x8x128xf32, #tpu.memory_space<vmem>>, vector<1x8x128xf32>
    %149 = vector.shape_cast %148 : vector<1x8x128xf32> to vector<8x128xf32>
    %150 = vector.shape_cast %146 : vector<8x128xf32> to vector<1x8x128xf32>
    tpu.vector_store %arg6[%147, %c0_60, %c0_61], %150 {strides = array<i32>} : memref<8x8x128xf32, #tpu.memory_space<vmem>>, vector<1x8x128xf32>,
    %151 = arith.extui %139 : vector<8x64xi1> to vector<8x64xi32>
    %152 = arith.sitofp %151 : vector<8x64xi32> to vector<8x64xf32>
    %c6_i32 = arith.constant 6 : i32
    %cst_62 = arith.constant dense<0.000000e+00> : vector<8x64xf32>
    %153 = tpu.matmul %152, %3, %cst_62 {dimension_numbers = #tpu.dot_dimension_numbers<[1], [0], [0], [1], [0, 0, 1, 1], [], []>} : vector<8x64xf32>, vector<64x64xf32>, vector<8x64xf32> -> vector<8x64xf32>
    %154 = arith.index_cast %c6_i32 : i32 to index
    %c0_63 = arith.constant 0 : index
    %c0_64 = arith.constant 0 : index
    %155 = vector.load %arg4[%154, %c0_63, %c0_64] : memref<8x8x64xf32, #tpu.memory_space<vmem>>, vector<1x8x64xf32>
    %156 = vector.shape_cast %155 : vector<1x8x64xf32> to vector<8x64xf32>
    %157 = arith.addf %156, %153 : vector<8x64xf32>
    %158 = arith.mulf %145, %6 : vector<8x64xf32>
    %159 = arith.addf %157, %158 : vector<8x64xf32>
    %cst_65 = arith.constant 3.000000e-01 : f32
    %160 = vector.broadcast %cst_65 : f32 to vector<8x64xf32>
    %161 = arith.subf %159, %160 : vector<8x64xf32>
    %cst_66 = arith.constant 0.000000e+00 : f32
    %162 = vector.broadcast %cst_66 : f32 to vector<8x64xf32>
    %163 = arith.cmpf ogt, %161, %162 : vector<8x64xf32>
    %164 = arith.extui %163 : vector<8x64xi1> to vector<8x64xi32>
    %165 = arith.sitofp %164 : vector<8x64xi32> to vector<8x64xf32>
    %cst_67 = arith.constant 3.000000e-01 : f32
    %166 = vector.broadcast %cst_67 : f32 to vector<8x64xf32>
    %167 = arith.cmpf olt, %159, %166 : vector<8x64xf32>
    %cst_68 = arith.constant 0.000000e+00 : f32
    %168 = vector.broadcast %cst_68 : f32 to vector<8x64xf32>
    %169 = arith.select %167, %159, %168 : vector<8x64xi1>, vector<8x64xf32>
    %170 = tpu.concatenate %169, %165 in 1 : vector<8x64xf32>, vector<8x64xf32> -> vector<8x128xf32>
    %171 = arith.index_cast %c6_i32 : i32 to index
    %c0_69 = arith.constant 0 : index
    %c0_70 = arith.constant 0 : index
    %172 = vector.load %arg6[%171, %c0_69, %c0_70] : memref<8x8x128xf32, #tpu.memory_space<vmem>>, vector<1x8x128xf32>
    %173 = vector.shape_cast %172 : vector<1x8x128xf32> to vector<8x128xf32>
    %174 = vector.shape_cast %170 : vector<8x128xf32> to vector<1x8x128xf32>
    tpu.vector_store %arg6[%171, %c0_69, %c0_70], %174 {strides = array<i32>} : memref<8x8x128xf32, #tpu.memory_space<vmem>>, vector<1x8x128xf32>,
    %175 = arith.extui %163 : vector<8x64xi1> to vector<8x64xi32>
    %176 = arith.sitofp %175 : vector<8x64xi32> to vector<8x64xf32>
    %c7_i32 = arith.constant 7 : i32
    %cst_71 = arith.constant dense<0.000000e+00> : vector<8x64xf32>
    %177 = tpu.matmul %176, %3, %cst_71 {dimension_numbers = #tpu.dot_dimension_numbers<[1], [0], [0], [1], [0, 0, 1, 1], [], []>} : vector<8x64xf32>, vector<64x64xf32>, vector<8x64xf32> -> vector<8x64xf32>
    %178 = arith.index_cast %c7_i32 : i32 to index
    %c0_72 = arith.constant 0 : index
    %c0_73 = arith.constant 0 : index
    %179 = vector.load %arg4[%178, %c0_72, %c0_73] : memref<8x8x64xf32, #tpu.memory_space<vmem>>, vector<1x8x64xf32>
    %180 = vector.shape_cast %179 : vector<1x8x64xf32> to vector<8x64xf32>
    %181 = arith.addf %180, %177 : vector<8x64xf32>
    %182 = arith.mulf %169, %6 : vector<8x64xf32>
    %183 = arith.addf %181, %182 : vector<8x64xf32>
    %cst_74 = arith.constant 3.000000e-01 : f32
    %184 = vector.broadcast %cst_74 : f32 to vector<8x64xf32>
    %185 = arith.subf %183, %184 : vector<8x64xf32>
    %cst_75 = arith.constant 0.000000e+00 : f32
    %186 = vector.broadcast %cst_75 : f32 to vector<8x64xf32>
    %187 = arith.cmpf ogt, %185, %186 : vector<8x64xf32>
    %188 = arith.extui %187 : vector<8x64xi1> to vector<8x64xi32>
    %189 = arith.sitofp %188 : vector<8x64xi32> to vector<8x64xf32>
    %cst_76 = arith.constant 3.000000e-01 : f32
    %190 = vector.broadcast %cst_76 : f32 to vector<8x64xf32>
    %191 = arith.cmpf olt, %183, %190 : vector<8x64xf32>
    %cst_77 = arith.constant 0.000000e+00 : f32
    %192 = vector.broadcast %cst_77 : f32 to vector<8x64xf32>
    %193 = arith.select %191, %183, %192 : vector<8x64xi1>, vector<8x64xf32>
    %194 = tpu.concatenate %193, %189 in 1 : vector<8x64xf32>, vector<8x64xf32> -> vector<8x128xf32>
    %195 = arith.index_cast %c7_i32 : i32 to index
    %c0_78 = arith.constant 0 : index
    %c0_79 = arith.constant 0 : index
    %196 = vector.load %arg6[%195, %c0_78, %c0_79] : memref<8x8x128xf32, #tpu.memory_space<vmem>>, vector<1x8x128xf32>
    %197 = vector.shape_cast %196 : vector<1x8x128xf32> to vector<8x128xf32>
    %198 = vector.shape_cast %194 : vector<8x128xf32> to vector<1x8x128xf32>
    tpu.vector_store %arg6[%195, %c0_78, %c0_79], %198 {strides = array<i32>} : memref<8x8x128xf32, #tpu.memory_space<vmem>>, vector<1x8x128xf32>,
    %199 = arith.extui %187 : vector<8x64xi1> to vector<8x64xi32>
    %200 = arith.sitofp %199 : vector<8x64xi32> to vector<8x64xf32>
    %c8_i32 = arith.constant 8 : i32
    %c0_80 = arith.constant 0 : index
    %c0_81 = arith.constant 0 : index
    %201 = vector.load %arg7[%c0_80, %c0_81] : memref<8x64xf32, #tpu.memory_space<vmem>>, vector<8x64xf32>
    tpu.vector_store %arg7[%c0_80, %c0_81], %193 {strides = array<i32>} : memref<8x64xf32, #tpu.memory_space<vmem>>, vector<8x64xf32>,
    %c0_82 = arith.constant 0 : index
    %c0_83 = arith.constant 0 : index
    %202 = vector.load %arg8[%c0_82, %c0_83] : memref<8x64xf32, #tpu.memory_space<vmem>>, vector<8x64xf32>
    tpu.vector_store %arg8[%c0_82, %c0_83], %200 {strides = array<i32>} : memref<8x64xf32, #tpu.memory_space<vmem>>, vector<8x64xf32>,
    return
  }
  func.func @transform_0(%arg0: i32) -> (i32, i32) {
    %c0_i32 = arith.constant 0 : i32
    %c0_i32_0 = arith.constant 0 : i32
    %c0_i32_1 = arith.constant 0 : i32
    return %c0_i32, %c0_i32_0 : i32, i32
  }
  func.func @transform_1(%arg0: i32) -> (i32, i32) {
    %c0_i32 = arith.constant 0 : i32
    %c0_i32_0 = arith.constant 0 : i32
    %c0_i32_1 = arith.constant 0 : i32
    return %c0_i32, %c0_i32_0 : i32, i32
  }
  func.func @transform_2(%arg0: i32) -> (i32, i32) {
    %c0_i32 = arith.constant 0 : i32
    %c0_i32_0 = arith.constant 0 : i32
    %c0_i32_1 = arith.constant 0 : i32
    return %c0_i32, %c0_i32_0 : i32, i32
  }
  func.func @transform_3(%arg0: i32) -> (i32, i32, i32) {
    %c0_i32 = arith.constant 0 : i32
    %c0_i32_0 = arith.constant 0 : i32
    %c0_i32_1 = arith.constant 0 : i32
    return %arg0, %c0_i32, %c0_i32_0 : i32, i32, i32
  }
  func.func @transform_4(%arg0: i32) -> (i32, i32) {
    %c0_i32 = arith.constant 0 : i32
    %c0_i32_0 = arith.constant 0 : i32
    %c0_i32_1 = arith.constant 0 : i32
    return %c0_i32, %c0_i32_0 : i32, i32
  }
  func.func @transform_5(%arg0: i32) -> (i32, i32, i32) {
    %c0_i32 = arith.constant 0 : i32
    %c0_i32_0 = arith.constant 0 : i32
    %c0_i32_1 = arith.constant 0 : i32
    return %arg0, %c0_i32, %c0_i32_0 : i32, i32, i32
  }
}

</mosaic_0001>

<bundles_post_ra>
// kernel: tpu_custom_call.1
= control target key start
LH: loop header
LB: loop body
LE: loop exit
PB: predicated region body
PF: predicated region fallthrough
CT: control target
= control target key end

     0   :  { %10 = vsyncpa [#allocation5], 0  ;;  %s775_s0 = inlined_call_operand.hbm [shape: f32[1,64], index: 0, kind: input, shape index: {}]   ;;  %s776_s1 = inlined_call_operand.hbm [shape: f32[8,64], index: 1, kind: input, shape index: {}]   ;;  %s777_s2 = inlined_call_operand.hbm [shape: f32[8,64], index: 2, kind: input, shape index: {}]   ;;  %s778_s3 = inlined_call_operand.hbm [shape: f32[8,8,64], index: 3, kind: input, shape index: {}]   ;;  %s779_s4 = inlined_call_operand.hbm [shape: f32[64,64], index: 4, kind: input, shape index: {}]   ;;  %s780_s5 = inlined_call_operand.hbm [shape: f32[8,8,128], index: 5, kind: output, shape index: {}]  }
   0x1   :  { %11 = vsyncpa [#allocation8], 0 }
   0x2   :  { %12 = vsyncpa [#allocation11], 0  ;;  %s30_s20 = sshll.u32 %s776_s1, 4  ;;  %s31_s20 = int_to_ptr.hbm [resolvable:$true] %s30_s20 }
   0x3   :  { %13 = vsyncpa [#allocation6], 0  ;;  %s666_s21 = smov [#allocation7]   ;;  %s51_s25 = sshll.u32 %s778_s3, 4  ;;  %s52_s25 = int_to_ptr.hbm [resolvable:$true] %s51_s25 }
   0x4   :  { %s32_s22 = sshll.u32 %s666_s21, 4  ;;  %s667_s26 = smov [#allocation10]   ;;  %s33_s22 = int_to_ptr.vmem [resolvable:$true] %s32_s22 }
   0x5   :  { %35 = dma.hbm_to_vmem [thread:$0]  %s31_s20, 128, %s33_s22, [#allocation8]  }
   0x6   :  { %s53_s27 = sshll.u32 %s667_s26, 4  ;;  %s668_s28 = smov 128   ;;  %s54_s27 = int_to_ptr.vmem [resolvable:$true] %s53_s27 }
   0x7   :  { %s669_s29 = smov 8   ;;  %s19_s6 = sshll.u32 %s775_s0, 4  ;;  %s20_s6 = int_to_ptr.hbm [resolvable:$true] %s19_s6 }
   0x8   :  { %59 = dma.hbm_to_vmem [thread:$0]  %s52_s25, 1024, %s54_s27, [#allocation11], %s668_s28, %s668_s28, %s669_s29  }
   0x9   :  { %s670_s7 = smov [#allocation4]   ;;  %s41_s10 = sshll.u32 %s777_s2, 4  ;;  %s42_s10 = int_to_ptr.hbm [resolvable:$true] %s41_s10 }
   0xa   :  { %s21_s8 = sshll.u32 %s670_s7, 4  ;;  %s671_s11 = smov [#allocation9]   ;;  %s22_s8 = int_to_ptr.vmem [resolvable:$true] %s21_s8 }
   0xb   :  { %24 = dma.hbm_to_vmem [thread:$0]  %s20_s6, 16, %s22_s8, [#allocation5]  }
   0xc   :  { %s43_s12 = sshll.u32 %s671_s11, 4  ;;  %s64_s15 = sshll.u32 %s779_s4, 4  ;;  %s44_s12 = int_to_ptr.vmem [resolvable:$true] %s43_s12  ;;  %s65_s15 = int_to_ptr.hbm [resolvable:$true] %s64_s15 }
   0xd   :  { %46 = dma.hbm_to_vmem [thread:$0]  %s42_s10, 128, %s44_s12, [#allocation8]  }
   0xe   :  { %s672_s0 = smov [#allocation12]  }
   0xf   :  { %s66_s16 = sshll.u32 %s672_s0, 4  ;;  %s67_s16 = int_to_ptr.vmem [resolvable:$true] %s66_s16 }
  0x10   :  { %72 = dma.hbm_to_vmem [thread:$0]  %s65_s15, 1024, %s67_s16, [#allocation11], %s668_s28, %s668_s28, %s669_s29  }
  0x11   :  { %658 = dma.done.wait [#allocation5], 16  }
  0x12   :  { %659 = vsyncadd [#allocation5], 4294967280 }
  0x13   :  { %660 = dma.done.wait [#allocation8], 256  }
  0x14   :  { %661 = vsyncadd [#allocation8], 4294967040 }
  0x15   :  { %662 = dma.done.wait [#allocation11], 2048  }
  0x16   :  { %663 = vsyncadd [#allocation11], 4294965248  ;;  %v109_v0 = vld [vmem:[#allocation12 + $0x38] sm:$0xff]  ;;  %v108_v1 = vld [vmem:[#allocation12 + $0x30] sm:$0xff]  ;;  %vm98_vm0 = vcmask 523264   ;;  %v673_v19 = vmov 0.0  }
  0x17   :  { %128 = vmatpush.msra.mxu0 %v109_v0  ;;  %166 = vmatpush.msra.mxu1 %v109_v0  ;;  %v107_v2 = vld [vmem:[#allocation12 + $0x28] sm:$0xff]  ;;  %v100_v3 = vld [vmem:[#allocation9] sm:$0xff]  ;;  %v97_v4 = vld [vmem:[#allocation7] sm:$0xff]  ;;  %s674_s2 = smov 64   ;;  %s675_s4 = smov [#allocation13]  }
  0x18   :  { %206 = vmatpush.msra.mxu2 %v109_v0  ;;  %246 = vmatpush.msra.mxu3 %v109_v0  ;;  %101 = vst.msk [vmem:[#allocation3] sm:$0xff] %vm98_vm0, %v100_v3  ;;  %v106_v5 = vld [vmem:[#allocation12 + $0x20] sm:$0xff]  ;;  %v105_v6 = vld [vmem:[#allocation12 + $0x18] sm:$0xff]  ;;  %v104_v7 = vld [vmem:[#allocation12 + $0x10] sm:$0xff]  ;;  %s442_s17 = sshll.u32 %s675_s4, 4  ;;  %s444_s20 = sshll.u32 %s780_s5, 4  ;;  %s443_s17 = int_to_ptr.vmem [resolvable:$true] %s442_s17  ;;  %s445_s20 = int_to_ptr.hbm [resolvable:$true] %s444_s20 }
  0x19   :  { %129 = vmatpush.msra.mxu0 %v108_v1  ;;  %167 = vmatpush.msra.mxu1 %v108_v1  ;;  %99 = vst.msk [vmem:[#allocation2] sm:$0xff] %vm98_vm0, %v97_v4  ;;  %v103_v8 = vld [vmem:[#allocation12 + $0x8] sm:$0xff]  ;;  %v102_v9 = vld [vmem:[#allocation12] sm:$0xff]  ;;  %v219_v36 = vld [vmem:[#allocation10 + $0x10] sm:$0xff] }
  0x1a   :  { %207 = vmatpush.msra.mxu2 %v108_v1  ;;  %247 = vmatpush.msra.mxu3 %v108_v1  ;;  %v730_v11 = vld [vmem:[#allocation4] ss:$0 sm:$0xff]  ;;  %v140_v13 = vld [vmem:[#allocation10] sm:$0xff]  ;;  %v259_v44 = vld [vmem:[#allocation10 + $0x18] sm:$0xff] }
  0x1b   :  { %130 = vmatpush.msra.mxu0 %v107_v2  ;;  %168 = vmatpush.msra.mxu1 %v107_v2  ;;  %v179_v22 = vld [vmem:[#allocation10 + $0x8] sm:$0xff]  ;;  %v299_v58 = vld [vmem:[#allocation10 + $0x20] sm:$0xff] }
  0x1c   :  { %208 = vmatpush.msra.mxu2 %v107_v2  ;;  %248 = vmatpush.msra.mxu3 %v107_v2 }
  0x1d   :  { %131 = vmatpush.msra.mxu0 %v106_v5  ;;  %169 = vmatpush.msra.mxu1 %v106_v5 }
  0x1e   :  { %209 = vmatpush.msra.mxu2 %v106_v5  ;;  %249 = vmatpush.msra.mxu3 %v106_v5 }
  0x1f   :  { %132 = vmatpush.msra.mxu0 %v105_v6  ;;  %170 = vmatpush.msra.mxu1 %v105_v6  ;;  %v115_v10 = vld [vmem:[#allocation3] sm:$0xff] }
  0x20   :  { %210 = vmatpush.msra.mxu2 %v105_v6  ;;  %250 = vmatpush.msra.mxu3 %v105_v6  ;;  %v114_v12 = vld [vmem:[#allocation2] sm:$0xff] }
  0x21   :  { %133 = vmatpush.msra.mxu0 %v104_v7  ;;  %171 = vmatpush.msra.mxu1 %v104_v7  ;;  %v142_v14 = vmul.f32 %v730_v11, %v114_v12 }
  0x22   :  { %211 = vmatpush.msra.mxu2 %v104_v7  ;;  %251 = vmatpush.msra.mxu3 %v104_v7 }
  0x23   :  { %134 = vmatpush.msra.mxu0 %v103_v8  ;;  %172 = vmatpush.msra.mxu1 %v103_v8 }
  0x24   :  { %212 = vmatpush.msra.mxu2 %v103_v8  ;;  %252 = vmatpush.msra.mxu3 %v103_v8 }
  0x25   :  { %135 = vmatpush.msra.mxu0 %v102_v9  ;;  %173 = vmatpush.msra.mxu1 %v102_v9 }
  0x26   :  { %459 = vmatmul.msk.f32.vlgmr.msra.gmra.mxu0 %vm98_vm0, %v115_v10  ;;  %213 = vmatpush.msra.mxu2 %v102_v9 }
  0x27   :  { %253 = vmatpush.msra.mxu3 %v102_v9  ;;  %286 = vmatpush.msrb.mxu0 %v109_v0 }
  0x28   :  { %326 = vmatpush.msrb.mxu1 %v109_v0  ;;  %366 = vmatpush.msrb.mxu2 %v109_v0 }
  0x29   :  { %287 = vmatpush.msrb.mxu0 %v108_v1  ;;  %406 = vmatpush.msrb.mxu3 %v109_v0 }
  0x2a   :  { %327 = vmatpush.msrb.mxu1 %v108_v1  ;;  %367 = vmatpush.msrb.mxu2 %v108_v1 }
  0x2b   :  { %288 = vmatpush.msrb.mxu0 %v107_v2  ;;  %407 = vmatpush.msrb.mxu3 %v108_v1 }
  0x2c   :  { %328 = vmatpush.msrb.mxu1 %v107_v2  ;;  %368 = vmatpush.msrb.mxu2 %v107_v2 }
  0x2d   :  { %289 = vmatpush.msrb.mxu0 %v106_v5  ;;  %408 = vmatpush.msrb.mxu3 %v107_v2  ;;  %v339_v2 = vld [vmem:[#allocation10 + $0x28] sm:$0xff] }
  0x2e   :  { %329 = vmatpush.msrb.mxu1 %v106_v5  ;;  %369 = vmatpush.msrb.mxu2 %v106_v5 }
  0x2f   :  { %290 = vmatpush.msrb.mxu0 %v105_v6  ;;  %409 = vmatpush.msrb.mxu3 %v106_v5 }
  0x30   :  { %330 = vmatpush.msrb.mxu1 %v105_v6  ;;  %370 = vmatpush.msrb.mxu2 %v105_v6 }
  0x31   :  { %291 = vmatpush.msrb.mxu0 %v104_v7  ;;  %410 = vmatpush.msrb.mxu3 %v105_v6 }
  0x32   :  { %331 = vmatpush.msrb.mxu1 %v104_v7  ;;  %371 = vmatpush.msrb.mxu2 %v104_v7 }
  0x33   :  { %292 = vmatpush.msrb.mxu0 %v103_v8  ;;  %411 = vmatpush.msrb.mxu3 %v104_v7 }
  0x34   :  { %332 = vmatpush.msrb.mxu1 %v103_v8  ;;  %372 = vmatpush.msrb.mxu2 %v103_v8 }
  0x35   :  { %293 = vmatpush.msrb.mxu0 %v102_v9  ;;  %412 = vmatpush.msrb.mxu3 %v103_v8 }
  0x36   :  { %333 = vmatpush.msrb.mxu1 %v102_v9  ;;  %373 = vmatpush.msrb.mxu2 %v102_v9 }
  0x37   :  { %413 = vmatpush.msrb.mxu3 %v102_v9 }
  0xa3   :  { %v137_v15 = vpop.f32.mrf.mxu0 }
  0xa4   :  { %v141_v16 = vadd.f32 %v140_v13, %v137_v15 }
  0xa6   :  { %v143_v17 = vadd.f32 %v142_v14, %v141_v16 }
  0xa8   :  { %v460_v18 = vadd.f32 -0.3, %v143_v17  ;;  %vm148_vm2 = vcmp.lt.f32.partialorder %v143_v17, 0.3 }
  0xa9   :  { %v149_v21 = vsel %vm148_vm2, %v143_v17, 0.0  ;;  %v379_v17 = vld [vmem:[#allocation10 + $0x30] sm:$0xff] }
  0xaa   :  { %vm145_vm1 = vcmp.gt.f32.partialorder %v460_v18, 0.0  ;;  %v181_v25 = vmul.f32 %v730_v11, %v149_v21 }
  0xab   :  { %v461_v20 = vsel %vm145_vm1, 1.0, %v673_v19 }
  0xac   :  { %462 = vmatmul.msk.f32.vlgmr.msra.gmra.mxu1 %vm98_vm0, %v461_v20 }
 0x129   :  { %v175_v23 = vpop.f32.mrf.mxu1 }
 0x12a   :  { %v180_v24 = vadd.f32 %v179_v22, %v175_v23 }
 0x12c   :  { %v182_v26 = vadd.f32 %v181_v25, %v180_v24 }
 0x12e   :  { %v463_v27 = vadd.f32 -0.3, %v182_v26  ;;  %vm187_vm4 = vcmp.lt.f32.partialorder %v182_v26, 0.3 }
 0x12f   :  { %v188_v33 = vsel %vm187_vm4, %v182_v26, 0.0  ;;  %v419_v26 = vld [vmem:[#allocation10 + $0x38] sm:$0xff] }
 0x130   :  { %vm184_vm3 = vcmp.gt.f32.partialorder %v463_v27, 0.0  ;;  %v221_v39 = vmul.f32 %v730_v11, %v188_v33 }
 0x131   :  { %v464_v28 = vsel %vm184_vm3, 1.0, %v673_v19 }
 0x132   :  { %465 = vmatmul.msk.f32.vlgmr.msra.gmra.mxu2 %vm98_vm0, %v464_v28  ;;  %v493_v29 = vpack.i.bf16 %v464_v28, %v461_v20 }
 0x134   :  { %494 = vrot.lane.b32.xlu0 %v493_v29, %s674_s2 }
 0x1a6   :  { %v495_v30 = vpop.permute.xlu0 %494 }
 0x1a7   :  { %v497_v31 = vunpack.i.h.bf16 %v495_v30  ;;  %v496_v32 = vunpack.i.l.bf16 %v495_v30 }
 0x1a9   :  { %v154_v34 = vsel %vm98_vm0, %v149_v21, %v496_v32  ;;  %v193_v35 = vsel %vm98_vm0, %v188_v33, %v497_v31 }
 0x1aa   :  { %155 = vst [vmem:[#allocation13] sm:$0xff] %v154_v34 }
 0x1ab   :  { %195 = vst [vmem:[#allocation13 + $0x8] sm:$0xff] %v193_v35 }
 0x1b5   :  { %v215_v37 = vpop.f32.mrf.mxu2 }
 0x1b6   :  { %v220_v38 = vadd.f32 %v219_v36, %v215_v37 }
 0x1b8   :  { %v222_v40 = vadd.f32 %v221_v39, %v220_v38 }
 0x1ba   :  { %v466_v41 = vadd.f32 -0.3, %v222_v40  ;;  %vm227_vm6 = vcmp.lt.f32.partialorder %v222_v40, 0.3 }
 0x1bb   :  { %v228_v43 = vsel %vm227_vm6, %v222_v40, 0.0 }
 0x1bc   :  { %vm224_vm5 = vcmp.gt.f32.partialorder %v466_v41, 0.0  ;;  %v261_v47 = vmul.f32 %v730_v11, %v228_v43 }
 0x1bd   :  { %v467_v42 = vsel %vm224_vm5, 1.0, %v673_v19 }
 0x1be   :  { %468 = vmatmul.msk.f32.vlgmr.msra.gmra.mxu3 %vm98_vm0, %v467_v42 }
 0x241   :  { %v255_v45 = vpop.f32.mrf.mxu3 }
 0x242   :  { %v260_v46 = vadd.f32 %v259_v44, %v255_v45 }
 0x244   :  { %v262_v48 = vadd.f32 %v261_v47, %v260_v46 }
 0x246   :  { %v469_v49 = vadd.f32 -0.3, %v262_v48  ;;  %vm267_vm8 = vcmp.lt.f32.partialorder %v262_v48, 0.3 }
 0x247   :  { %v268_v55 = vsel %vm267_vm8, %v262_v48, 0.0 }
 0x248   :  { %vm264_vm7 = vcmp.gt.f32.partialorder %v469_v49, 0.0  ;;  %v301_v61 = vmul.f32 %v730_v11, %v268_v55 }
 0x249   :  { %v470_v50 = vsel %vm264_vm7, 1.0, %v673_v19 }
 0x24a   :  { %471 = vmatmul.msk.f32.vlgmr.msrb.gmra.mxu0 %vm98_vm0, %v470_v50  ;;  %v498_v51 = vpack.i.bf16 %v470_v50, %v467_v42 }
 0x24c   :  { %499 = vrot.lane.b32.xlu0 %v498_v51, %s674_s2 }
 0x2be   :  { %v500_v52 = vpop.permute.xlu0 %499 }
 0x2bf   :  { %v502_v53 = vunpack.i.h.bf16 %v500_v52  ;;  %v501_v54 = vunpack.i.l.bf16 %v500_v52 }
 0x2c1   :  { %v273_v56 = vsel %vm98_vm0, %v268_v55, %v502_v53  ;;  %v233_v57 = vsel %vm98_vm0, %v228_v43, %v501_v54 }
 0x2c2   :  { %275 = vst [vmem:[#allocation13 + $0x18] sm:$0xff] %v273_v56 }
 0x2c3   :  { %235 = vst [vmem:[#allocation13 + $0x10] sm:$0xff] %v233_v57 }
 0x2c7   :  { %v295_v59 = vpop.f32.mrf.mxu0 }
 0x2c8   :  { %v300_v60 = vadd.f32 %v299_v58, %v295_v59 }
 0x2ca   :  { %v302_v62 = vadd.f32 %v301_v61, %v300_v60 }
 0x2cc   :  { %v472_v63 = vadd.f32 -0.3, %v302_v62  ;;  %vm307_vm10 = vcmp.lt.f32.partialorder %v302_v62, 0.3 }
 0x2cd   :  { %v308_v1 = vsel %vm307_vm10, %v302_v62, 0.0 }
 0x2ce   :  { %vm304_vm9 = vcmp.gt.f32.partialorder %v472_v63, 0.0  ;;  %v341_v5 = vmul.f32 %v730_v11, %v308_v1 }
 0x2cf   :  { %v473_v0 = vsel %vm304_vm9, 1.0, %v673_v19 }
 0x2d0   :  { %474 = vmatmul.msk.f32.vlgmr.msrb.gmra.mxu1 %vm98_vm0, %v473_v0 }
 0x34d   :  { %v335_v3 = vpop.f32.mrf.mxu1 }
 0x34e   :  { %v340_v4 = vadd.f32 %v339_v2, %v335_v3 }
 0x350   :  { %v342_v6 = vadd.f32 %v341_v5, %v340_v4 }
 0x352   :  { %v475_v7 = vadd.f32 -0.3, %v342_v6  ;;  %vm347_vm12 = vcmp.lt.f32.partialorder %v342_v6, 0.3 }
 0x353   :  { %v348_v14 = vsel %vm347_vm12, %v342_v6, 0.0 }
 0x354   :  { %vm344_vm11 = vcmp.gt.f32.partialorder %v475_v7, 0.0  ;;  %v381_v21 = vmul.f32 %v730_v11, %v348_v14 }
 0x355   :  { %v476_v8 = vsel %vm344_vm11, 1.0, %v673_v19 }
 0x356   :  { %477 = vmatmul.msk.f32.vlgmr.msrb.gmra.mxu2 %vm98_vm0, %v476_v8  ;;  %v503_v9 = vpack.i.bf16 %v476_v8, %v473_v0 }
 0x358   :  { %504 = vrot.lane.b32.xlu1 %v503_v9, %s674_s2 }
 0x3ca   :  { %v505_v10 = vpop.permute.xlu1 %504 }
 0x3cb   :  { %v507_v12 = vunpack.i.h.bf16 %v505_v10  ;;  %v506_v13 = vunpack.i.l.bf16 %v505_v10 }
 0x3cd   :  { %v313_v15 = vsel %vm98_vm0, %v308_v1, %v506_v13  ;;  %v353_v16 = vsel %vm98_vm0, %v348_v14, %v507_v12 }
 0x3ce   :  { %315 = vst [vmem:[#allocation13 + $0x20] sm:$0xff] %v313_v15 }
 0x3cf   :  { %355 = vst [vmem:[#allocation13 + $0x28] sm:$0xff] %v353_v16 }
 0x3d9   :  { %v375_v18 = vpop.f32.mrf.mxu2 }
 0x3da   :  { %v380_v20 = vadd.f32 %v379_v17, %v375_v18 }
 0x3dc   :  { %v382_v22 = vadd.f32 %v381_v21, %v380_v20 }
 0x3de   :  { %v478_v23 = vadd.f32 -0.3, %v382_v22  ;;  %vm387_vm14 = vcmp.lt.f32.partialorder %v382_v22, 0.3 }
 0x3df   :  { %v388_v25 = vsel %vm387_vm14, %v382_v22, 0.0 }
 0x3e0   :  { %vm384_vm13 = vcmp.gt.f32.partialorder %v478_v23, 0.0  ;;  %v421_v29 = vmul.f32 %v730_v11, %v388_v25 }
 0x3e1   :  { %v479_v24 = vsel %vm384_vm13, 1.0, %v673_v19 }
 0x3e2   :  { %480 = vmatmul.msk.f32.vlgmr.msrb.gmra.mxu3 %vm98_vm0, %v479_v24 }
 0x465   :  { %v415_v27 = vpop.f32.mrf.mxu3 }
 0x466   :  { %v420_v28 = vadd.f32 %v419_v26, %v415_v27 }
 0x468   :  { %v422_v30 = vadd.f32 %v421_v29, %v420_v28 }
 0x46a   :  { %vm427_vm15 = vcmp.lt.f32.partialorder %v422_v30, 0.3  ;;  %v481_v31 = vadd.f32 -0.3, %v422_v30 }
 0x46b   :  { %v428_v32 = vsel %vm427_vm15, %v422_v30, 0.0 }
 0x46c   :  { %436 = vst.msk [vmem:[#allocation2] sm:$0xff] %vm98_vm0, %v428_v32  ;;  %vm424_vm1 = vcmp.gt.f32.partialorder %v481_v31, 0.0 }
 0x46d   :  { %v482_v33 = vsel %vm424_vm1, 1.0, %v673_v19 }
 0x46e   :  { %v508_v34 = vpack.i.bf16 %v482_v33, %v479_v24  ;;  %437 = vst.msk [vmem:[#allocation3] sm:$0xff] %vm98_vm0, %v482_v33 }
 0x470   :  { %509 = vrot.lane.b32.xlu1 %v508_v34, %s674_s2 }
 0x4e2   :  { %v510_v35 = vpop.permute.xlu1 %509 }
 0x4e3   :  { %v512_v11 = vunpack.i.h.bf16 %v510_v35  ;;  %v511_v36 = vunpack.i.l.bf16 %v510_v35 }
 0x4e5   :  { %v433_v37 = vsel %vm98_vm0, %v428_v32, %v512_v11  ;;  %v393_v38 = vsel %vm98_vm0, %v388_v25, %v511_v36 }
 0x4e6   :  { %435 = vst [vmem:[#allocation13 + $0x38] sm:$0xff] %v433_v37 }
 0x4e7   :  { %395 = vst [vmem:[#allocation13 + $0x30] sm:$0xff] %v393_v38 }
 0x4e8   :  { %450 = dma.vmem_to_hbm [thread:$0]  %s443_s17, 1024, %s445_s20, [#allocation6], %s668_s28, %s668_s28, %s669_s29  }
 0x4e9   :  { %664 = dma.done.wait [#allocation6], 1024  }
 0x4ea   :  { %665 = vsyncadd [#allocation6], 4294966272 }
 0x4eb   :  { %455 = vsyncpa [#allocation5], 1 }
 0x4ec   :  { %456 = vsyncpa [#allocation8], 1 }
 0x4ed   :  { %457 = vsyncpa [#allocation11], 1 }
 0x4ee   :  { %458 = vsyncpa [#allocation6], 1 }

</bundles_post_ra>
